<compile_context>
chip_gen: v6e
topology: v6e:2x2x1
jax: 0.10.0
libtpu: 0.0.40
codegen_flags: <defaults>
</compile_context>

<pallas_src>
import functools

import jax
import jax.numpy as jnp
from jax.experimental import pallas as pl
from jax.experimental.pallas import tpu as pltpu

HIDDEN = 128  # hidden width of the DQN MLP (fixed by the module)


def _round_up(x, m):
    return (x + m - 1) // m * m


def dqn_forward_kernel(x_ref, w23_ref, fb_ref, out_ref, *, n_obs, hidden,
                       n_actions):
    # x_ref:   (tb, n_obs)        f32
    # w23_ref: (2*hidden, hidden) bf16   rows [0:H) = W2, [H:2H) = W3 (cols >= n_actions are 0)
    # fb_ref:  (n_obs+3, hidden)  f32    rows [0:n_obs) = W1, then b1, b2, b3
    # out_ref: (tb, n_actions)    f32
    x = x_ref[...]                                     # (tb, n_obs) f32
    w2 = w23_ref[0:hidden, :]                          # (128, 128) bf16
    w3 = w23_ref[hidden:2 * hidden, :]                 # (128, 128) bf16
    w1 = fb_ref[0:n_obs, :]                            # (n_obs, 128) f32
    b1 = fb_ref[n_obs:n_obs + 1, :]                    # (1, 128) f32
    b2 = fb_ref[n_obs + 1:n_obs + 2, :]
    b3 = fb_ref[n_obs + 2:n_obs + 3, :]

    # Layer 1 on the VPU: n_obs is tiny (4), so a few broadcast multiply-adds
    # beat a K=4 MXU push and remove any need to zero-pad x.
    h1 = b1 + x[:, 0:1] * w1[0:1, :]                   # (tb, 128) f32
    for k in range(1, n_obs):
        h1 = h1 + x[:, k:k + 1] * w1[k:k + 1, :]
    h1 = jnp.maximum(h1, 0.0)

    # Layers 2 & 3 on the MXU: bf16 operands, f32 accumulation.
    h2 = jnp.dot(h1.astype(jnp.bfloat16), w2,
                 preferred_element_type=jnp.float32) + b2
    h2 = jnp.maximum(h2, 0.0)
    q = jnp.dot(h2.astype(jnp.bfloat16), w3,
                preferred_element_type=jnp.float32) + b3
    # Narrow (masked) store: only the live action lanes go back to HBM.
    out_ref[...] = q[:, :n_actions].astype(out_ref.dtype)


def pack_params(params, n_observations, hidden=HIDDEN):
    """Pack PyTorch-layout params into two resident buffers.

    Returns:
      w23: (2*hidden, hidden) bf16  — W2 stacked over W3 (W3 cols zero-padded
           to `hidden` lanes so the packed buffer is lane-dense).
      fb : (n_observations+3, hidden) f32 — W1 rows, then b1, b2, b3
           (b3 cols zero-padded).
    """
    n_actions = params["w3"].shape[1]
    assert hidden == HIDDEN and n_actions <= hidden and n_observations <= hidden

    w2 = params["w2"].astype(jnp.bfloat16)
    w3 = jnp.zeros((hidden, hidden), jnp.bfloat16).at[:, :n_actions].set(
        params["w3"].astype(jnp.bfloat16))
    w23 = jnp.concatenate([w2, w3], axis=0)            # (256, 128) bf16

    b3 = jnp.zeros((1, hidden), jnp.float32).at[:, :n_actions].set(
        params["b3"].reshape(1, -1).astype(jnp.float32))
    fb = jnp.concatenate([
        params["w1"].astype(jnp.float32),              # (n_obs, 128)
        params["b1"].reshape(1, hidden).astype(jnp.float32),
        params["b2"].reshape(1, hidden).astype(jnp.float32),
        b3,
    ], axis=0)                                         # (n_obs + 3, 128) f32
    return w23, fb


def _batch_tiles(B, block_b):
    """Pick (num_tiles, tile_rows). Guarantees >= 2 tiles whenever B > 8 so the
    'parallel' batch axis can occupy both v7x TensorCores, keeps tiles balanced
    (no 2x padding cliff), and caps the tile at block_b rows."""
    if B <= 8:
        return 1, B                      # full-array block (legal: equals dim)
    nt = max(pl.cdiv(B, block_b), 2)
    tb = _round_up(pl.cdiv(B, nt), 8)    # f32 sublane granule
    return nt, tb


def dqn_forward(x, w23, fb, n_actions, *, hidden=HIDDEN, block_b=512):
    """x: (B, n_obs) f32. Returns (B, n_actions) f32 Q-values."""
    B, n_obs = x.shape
    if x.dtype != jnp.float32:
        x = x.astype(jnp.float32)

    nt, tb = _batch_tiles(B, block_b)

    kernel = functools.partial(dqn_forward_kernel, n_obs=n_obs, hidden=hidden,
                               n_actions=n_actions)
    out = pl.pallas_call(
        kernel,
        out_shape=jax.ShapeDtypeStruct((B, n_actions), jnp.float32),
        grid=(nt,),
        in_specs=[
            pl.BlockSpec((tb, n_obs), lambda i: (i, 0)),   # x tiled over batch
            pl.BlockSpec(w23.shape, lambda i: (0, 0)),     # bf16 weights resident
            pl.BlockSpec(fb.shape, lambda i: (0, 0)),      # f32 W1 + biases resident
        ],
        out_specs=pl.BlockSpec((tb, n_actions), lambda i: (i, 0)),
        compiler_params=pltpu.CompilerParams(
            dimension_semantics=("parallel",)),
    )(x, w23, fb)
    return out


def init_params(key, n_observations, n_actions, hidden=HIDDEN):
    """Deterministic init mimicking PyTorch nn.Linear (uniform +-1/sqrt(fan_in)),
    with weights stored (in, out)."""
    ks = jax.random.split(key, 6)

    def linear(kw, kb, fan_in, fan_out):
        bound = 1.0 / jnp.sqrt(fan_in)
        w = jax.random.uniform(kw, (fan_in, fan_out), jnp.float32, -bound, bound)
        b = jax.random.uniform(kb, (1, fan_out), jnp.float32, -bound, bound)
        return w, b

    w1, b1 = linear(ks[0], ks[1], n_observations, hidden)
    w2, b2 = linear(ks[2], ks[3], hidden, hidden)
    w3, b3 = linear(ks[4], ks[5], hidden, n_actions)
    return {"w1": w1, "b1": b1, "w2": w2, "b2": b2, "w3": w3, "b3": b3}


def dqn_forward_ref(x, p):
    """Pure f32 reference (HIGHEST precision matmuls)."""
    hp = jax.lax.Precision.HIGHEST
    h1 = jnp.maximum(jnp.dot(x, p["w1"], precision=hp) + p["b1"], 0.0)
    h2 = jnp.maximum(jnp.dot(h1, p["w2"], precision=hp) + p["b2"], 0.0)
    return jnp.dot(h2, p["w3"], precision=hp) + p["b3"]


def dqn_forward_emu_ref(x, p):
    """Reference emulating the kernel arithmetic (bf16 operands, f32 accum)."""
    hp = jax.lax.Precision.HIGHEST
    f32 = jnp.float32
    h1 = jnp.maximum(jnp.dot(x, p["w1"], precision=hp) + p["b1"], 0.0)
    w2 = p["w2"].astype(jnp.bfloat16).astype(f32)
    w3 = p["w3"].astype(jnp.bfloat16).astype(f32)
    h2 = jnp.maximum(
        jnp.dot(h1.astype(jnp.bfloat16).astype(f32), w2, precision=hp) + p["b2"],
        0.0)
    return jnp.dot(h2.astype(jnp.bfloat16).astype(f32), w3, precision=hp) + p["b3"]


# TODO(synk): select_action / epsilon_threshold are host-side RL control logic
# (python RNG + step counter); argmax over the returned Q-values is left to the
# caller (could be fused into the kernel epilogue for the acting path).


if __name__ == "__main__":
    # CartPole-v1: n_observations = 4, n_actions = 2
    n_observations, n_actions = 4, 2

    key = jax.random.PRNGKey(0)
    k_params, k_data = jax.random.split(key)
    params = init_params(k_params, n_observations, n_actions)
    w23, fb = pack_params(params, n_observations)

    # (B, block_b): acting path (B=1, like state.unsqueeze(0)), an uneven
    # replay batch (masked boundary block, grid=2), and an even replay batch.
    cases = ((1, 512), (50, 512), (128, 512))
    for idx, (B, blk) in enumerate(cases):
        kx = jax.random.fold_in(k_data, idx)
        x = jax.random.normal(kx, (B, n_observations), jnp.float32)
        out = jax.block_until_ready(
            dqn_forward(x, w23, fb, n_actions, block_b=blk))
        assert out.shape == (B, n_actions)

        emu = dqn_forward_emu_ref(x, params)
        ref = dqn_forward_ref(x, params)
        assert jnp.allclose(out, emu, atol=1e-3, rtol=1e-3), (B, "emu mismatch")
        assert jnp.allclose(out, ref, atol=5e-2, rtol=5e-2), (B, "f32 mismatch")

    print("KERNEL_OK")
</pallas_src>

<mosaic_0001>
module attributes {stable_mosaic.version = 11 : i64} {
  func.func @dqn_forward_kernel(%arg0: i32, %arg1: memref<1x4xf32, #tpu.memory_space<vmem>>, %arg2: memref<256x128xbf16, #tpu.memory_space<vmem>>, %arg3: memref<7x128xf32, #tpu.memory_space<vmem>>, %arg4: memref<1x2xf32, #tpu.memory_space<vmem>>) attributes {dimension_semantics = [#tpu.dimension_semantics<parallel>], iteration_bounds = array<i64: 1>, scalar_prefetch = 0 : i64, scratch_operands = 0 : i64, tpu.core_type = #tpu.core_type<tc>, window_params = [{transform_indices = @transform_0, window_bounds = array<i64: 1, 4>}, {pipeline_mode = #tpu.pipeline_mode<synchronous>, transform_indices = @transform_1, window_bounds = array<i64: 256, 128>}, {pipeline_mode = #tpu.pipeline_mode<synchronous>, transform_indices = @transform_2, window_bounds = array<i64: 7, 128>}, {transform_indices = @transform_3, window_bounds = array<i64: 1, 2>}]} {
    %c0 = arith.constant 0 : index
    %c0_0 = arith.constant 0 : index
    %0 = vector.load %arg1[%c0, %c0_0] : memref<1x4xf32, #tpu.memory_space<vmem>>, vector<1x4xf32>
    %c0_1 = arith.constant 0 : index
    %c0_2 = arith.constant 0 : index
    %1 = vector.load %arg2[%c0_1, %c0_2] : memref<256x128xbf16, #tpu.memory_space<vmem>>, vector<128x128xbf16>
    %c128 = arith.constant 128 : index
    %c0_3 = arith.constant 0 : index
    %2 = vector.load %arg2[%c128, %c0_3] : memref<256x128xbf16, #tpu.memory_space<vmem>>, vector<128x128xbf16>
    %c0_4 = arith.constant 0 : index
    %c0_5 = arith.constant 0 : index
    %3 = vector.load %arg3[%c0_4, %c0_5] : memref<7x128xf32, #tpu.memory_space<vmem>>, vector<4x128xf32>
    %c4 = arith.constant 4 : index
    %c0_6 = arith.constant 0 : index
    %4 = vector.load %arg3[%c4, %c0_6] : memref<7x128xf32, #tpu.memory_space<vmem>>, vector<1x128xf32>
    %c5 = arith.constant 5 : index
    %c0_7 = arith.constant 0 : index
    %5 = vector.load %arg3[%c5, %c0_7] : memref<7x128xf32, #tpu.memory_space<vmem>>, vector<1x128xf32>
    %c6 = arith.constant 6 : index
    %c0_8 = arith.constant 0 : index
    %6 = vector.load %arg3[%c6, %c0_8] : memref<7x128xf32, #tpu.memory_space<vmem>>, vector<1x128xf32>
    %7 = vector.extract_strided_slice %0 {offsets = [0, 0], sizes = [1, 1], strides = [1, 1]} : vector<1x4xf32> to vector<1x1xf32>
    %8 = vector.extract_strided_slice %3 {offsets = [0, 0], sizes = [1, 128], strides = [1, 1]} : vector<4x128xf32> to vector<1x128xf32>
    %9 = vector.broadcast %7 : vector<1x1xf32> to vector<1x128xf32>
    %10 = arith.mulf %9, %8 : vector<1x128xf32>
    %11 = arith.addf %4, %10 : vector<1x128xf32>
    %12 = vector.extract_strided_slice %0 {offsets = [0, 1], sizes = [1, 1], strides = [1, 1]} : vector<1x4xf32> to vector<1x1xf32>
    %13 = vector.extract_strided_slice %3 {offsets = [1, 0], sizes = [1, 128], strides = [1, 1]} : vector<4x128xf32> to vector<1x128xf32>
    %14 = vector.broadcast %12 : vector<1x1xf32> to vector<1x128xf32>
    %15 = arith.mulf %14, %13 : vector<1x128xf32>
    %16 = arith.addf %11, %15 : vector<1x128xf32>
    %17 = vector.extract_strided_slice %0 {offsets = [0, 2], sizes = [1, 1], strides = [1, 1]} : vector<1x4xf32> to vector<1x1xf32>
    %18 = vector.extract_strided_slice %3 {offsets = [2, 0], sizes = [1, 128], strides = [1, 1]} : vector<4x128xf32> to vector<1x128xf32>
    %19 = vector.broadcast %17 : vector<1x1xf32> to vector<1x128xf32>
    %20 = arith.mulf %19, %18 : vector<1x128xf32>
    %21 = arith.addf %16, %20 : vector<1x128xf32>
    %22 = vector.extract_strided_slice %0 {offsets = [0, 3], sizes = [1, 1], strides = [1, 1]} : vector<1x4xf32> to vector<1x1xf32>
    %23 = vector.extract_strided_slice %3 {offsets = [3, 0], sizes = [1, 128], strides = [1, 1]} : vector<4x128xf32> to vector<1x128xf32>
    %24 = vector.broadcast %22 : vector<1x1xf32> to vector<1x128xf32>
    %25 = arith.mulf %24, %23 : vector<1x128xf32>
    %26 = arith.addf %21, %25 : vector<1x128xf32>
    %cst = arith.constant 0.000000e+00 : f32
    %27 = vector.broadcast %cst : f32 to vector<1x128xf32>
    %28 = arith.maximumf %26, %27 : vector<1x128xf32>
    %29 = arith.truncf %28 : vector<1x128xf32> to vector<1x128xbf16>
    %cst_9 = arith.constant dense<0.000000e+00> : vector<1x128xf32>
    %30 = tpu.matmul %29, %1, %cst_9 {dimension_numbers = #tpu.dot_dimension_numbers<[1], [0], [0], [1], [0, 0, 1, 1], [], []>} : vector<1x128xbf16>, vector<128x128xbf16>, vector<1x128xf32> -> vector<1x128xf32>
    %31 = arith.addf %30, %5 : vector<1x128xf32>
    %cst_10 = arith.constant 0.000000e+00 : f32
    %32 = vector.broadcast %cst_10 : f32 to vector<1x128xf32>
    %33 = arith.maximumf %31, %32 : vector<1x128xf32>
    %34 = arith.truncf %33 : vector<1x128xf32> to vector<1x128xbf16>
    %cst_11 = arith.constant dense<0.000000e+00> : vector<1x128xf32>
    %35 = tpu.matmul %34, %2, %cst_11 {dimension_numbers = #tpu.dot_dimension_numbers<[1], [0], [0], [1], [0, 0, 1, 1], [], []>} : vector<1x128xbf16>, vector<128x128xbf16>, vector<1x128xf32> -> vector<1x128xf32>
    %36 = arith.addf %35, %6 : vector<1x128xf32>
    %37 = vector.extract_strided_slice %36 {offsets = [0, 0], sizes = [1, 2], strides = [1, 1]} : vector<1x128xf32> to vector<1x2xf32>
    %c0_12 = arith.constant 0 : index
    %c0_13 = arith.constant 0 : index
    %38 = vector.load %arg4[%c0_12, %c0_13] : memref<1x2xf32, #tpu.memory_space<vmem>>, vector<1x2xf32>
    tpu.vector_store %arg4[%c0_12, %c0_13], %37 {strides = array<i32>} : memref<1x2xf32, #tpu.memory_space<vmem>>, vector<1x2xf32>,
    return
  }
  func.func @transform_0(%arg0: i32) -> (i32, i32) {
    %c0_i32 = arith.constant 0 : i32
    %c0_i32_0 = arith.constant 0 : i32
    return %arg0, %c0_i32 : i32, i32
  }
  func.func @transform_1(%arg0: i32) -> (i32, i32) {
    %c0_i32 = arith.constant 0 : i32
    %c0_i32_0 = arith.constant 0 : i32
    %c0_i32_1 = arith.constant 0 : i32
    return %c0_i32, %c0_i32_0 : i32, i32
  }
  func.func @transform_2(%arg0: i32) -> (i32, i32) {
    %c0_i32 = arith.constant 0 : i32
    %c0_i32_0 = arith.constant 0 : i32
    %c0_i32_1 = arith.constant 0 : i32
    return %c0_i32, %c0_i32_0 : i32, i32
  }
  func.func @transform_3(%arg0: i32) -> (i32, i32) {
    %c0_i32 = arith.constant 0 : i32
    %c0_i32_0 = arith.constant 0 : i32
    return %arg0, %c0_i32 : i32, i32
  }
}

</mosaic_0001>

<bundles_post_ra>
// kernel: tpu_custom_call.1
= control target key start
LH: loop header
LB: loop body
LE: loop exit
PB: predicated region body
PF: predicated region fallthrough
CT: control target
= control target key end

     0   :  { %8 = vsyncpa [#allocation3], 0  ;;  %s593_s0 = inlined_call_operand.hbm [shape: f32[1,4], index: 0, kind: input, shape index: {}]   ;;  %s594_s1 = inlined_call_operand.hbm [shape: bf16[256,128], index: 1, kind: input, shape index: {}]   ;;  %s595_s2 = inlined_call_operand.hbm [shape: f32[7,128], index: 2, kind: input, shape index: {}]   ;;  %s596_s3 = inlined_call_operand.hbm [shape: f32[1,2], index: 3, kind: output, shape index: {}]  }
   0x1   :  { %9 = vsyncpa [#allocation6], 0 }
   0x2   :  { %10 = vsyncpa [#allocation4], 0  ;;  %s531_s12 = smov [#allocation5]  }
   0x3   :  { %s26_s13 = sshll.u32 %s531_s12, 4  ;;  %s27_s13 = int_to_ptr.vmem [resolvable:$true] %s26_s13 }
   0x4   :  { %s453_s14 = scalar_lea.vmem %s27_s13, 2048  ;;  %p458_p1 = scmp.lt.s32.totalorder %s27_s13, %s27_s13 }
   0x5   :  { %p454_p0 = scmp.ne.s32.totalorder %s27_s13, %s453_s14  ;;  %p459_p2 = scmp.lt.s32.totalorder %s453_s14, %s453_s14 }
   0x7   :  { %p460_p3 = por %p459_p2, %p458_p1 }
   0x9   :  { %p461_p4 = pnand %p460_p3, %p454_p0 }
   0xb   :  { %464 = shalt.err (!%p461_p4)
}
   0xc   :  { %s532_s15 = smov 64   ;;  %s533_s16 = smov 4  }
   0xd   :  { %32 = dma.hbm_to_vmem [thread:$0]  %s594_s1, 2048, %s27_s13, [#allocation6], %s532_s15, %s532_s15, %s533_s16  }
   0xe   :  { %s534_s19 = smov [#allocation2]   ;;  %s535_s21 = smov [#allocation7]  }
   0xf   :  { %s17_s20 = sshll.u32 %s534_s19, 4  ;;  %s39_s22 = sshll.u32 %s535_s21, 4  ;;  %s18_s20 = int_to_ptr.vmem [resolvable:$true] %s17_s20  ;;  %s40_s22 = int_to_ptr.vmem [resolvable:$true] %s39_s22 }
  0x10   :  { %s473_s23 = scalar_lea.vmem %s18_s20, 16  ;;  %s477_s24 = scalar_lea.vmem %s18_s20, 32 }
  0x11   :  { %p474_p5 = scmp.ne.s32.totalorder %s18_s20, %s473_s23  ;;  %p478_p6 = scmp.lt.s32.totalorder %s18_s20, %s18_s20 }
  0x12   :  { %p479_p7 = scmp.lt.s32.totalorder %s477_s24, %s473_s23 }
  0x14   :  { %p480_p8 = por %p479_p7, %p478_p6 }
  0x16   :  { %p481_p9 = pnand %p480_p8, %p474_p5 }
  0x18   :  { %484 = shalt.err (!%p481_p9)
}
  0x19   :  { %20 = dma.hbm_to_vmem [thread:$0]  %s593_s0, 16, %s18_s20, [#allocation3]  }
  0x1a   :  { %s493_s27 = scalar_lea.vmem %s40_s22, 128  ;;  %p498_p11 = scmp.lt.s32.totalorder %s40_s22, %s40_s22 }
  0x1b   :  { %p494_p10 = scmp.ne.s32.totalorder %s40_s22, %s493_s27  ;;  %p499_p12 = scmp.lt.s32.totalorder %s493_s27, %s493_s27 }
  0x1d   :  { %p500_p13 = por %p499_p12, %p498_p11 }
  0x1f   :  { %p501_p0 = pnand %p500_p13, %p494_p10 }
  0x21   :  { %504 = shalt.err (!%p501_p0)
}
  0x22   :  { %42 = dma.hbm_to_vmem [thread:$0]  %s595_s2, 128, %s40_s22, [#allocation6]  }
  0x23   :  { %525 = dma.done.wait [#allocation3], 16  }
  0x24   :  { %526 = vsyncadd [#allocation3], 4294967280 }
  0x25   :  { %527 = dma.done.wait [#allocation6], 2176  }
  0x26   :  { %528 = vsyncadd [#allocation6], 4294965120  ;;  %v536_v0 = vmov 0   ;;  %v537_v1 = vmov 2   ;;  %v538_v2 = vmov 0.0   ;;  %v429_v4 = vld [vmem:[#allocation5 + $0x38] sm:$0xff]   ;;  %v95_v20 = vlaneseq }
  0x27   :  { %424 = vset.pattern.permute.xlu0 %v536_v0  ;;  %426 = vset.pattern.permute.xlu1 %v537_v1  ;;  %v53_v3 = vld [vmem:[#allocation2] sm:$0x1]  ;;  %v430_v5 = vld [vmem:[#allocation5 + $0x30] sm:$0xff]   ;;  %v539_v6 = vmov 1   ;;  %v540_v7 = vmov 3   ;;  %v431_v8 = vld [vmem:[#allocation5 + $0x28] sm:$0xff]  }
  0x28   :  { %372 = vmatprep.subr.bf16.mxu0 %v538_v2  ;;  %392 = vmatprep.subr.bf16.mxu1 %v538_v2  ;;  %v432_v9 = vld [vmem:[#allocation5 + $0x20] sm:$0xff]   ;;  %vm541_vm0 = vmmov 0   ;;  %v433_v10 = vld [vmem:[#allocation5 + $0x18] sm:$0xff]   ;;  %v434_v12 = vld [vmem:[#allocation5 + $0x10] sm:$0xff]   ;;  %v96_v21 = vshrl.u32 %v95_v20, 7  ;;  %s542_s0 = smov [#allocation8]  }
  0x29   :  { %92 = vperm.xlu0 %424, %v53_v3   ;;  %115 = vperm.xlu1 %426, %v53_v3   ;;  %v437_v11 = vld [vmem:[#allocation5 + $0x78] sm:$0xff]   ;;  %v438_v13 = vld [vmem:[#allocation5 + $0x70] sm:$0xff]   ;;  %v435_v14 = vld [vmem:[#allocation5 + $0x8] sm:$0xff]   ;;  %s328_s2 = sshll.u32 %s542_s0, 4  ;;  %vm320_vm1 = vcmask 8192   ;;  %s329_s2 = int_to_ptr.vmem [resolvable:$true] %s328_s2 }
  0x2a   :  { %373 = vmatpush3.bf16.msra.mxu0 %v429_v4  ;;  %388 = vmatprep.mubr.msk.bf16.mxu0 %vm541_vm0, %v538_v2  ;;  %v439_v15 = vld [vmem:[#allocation5 + $0x68] sm:$0xff]   ;;  %v436_v16 = vld [vmem:[#allocation5] sm:$0xff]   ;;  %v441_v18 = vld [vmem:[#allocation5 + $0x58] sm:$0xff]   ;;  %v97_v22 = vsub.s32 0, %v96_v21  ;;  %s505_s29 = scalar_lea.vmem %s329_s2, 16  ;;  %s509_s30 = scalar_lea.vmem %s329_s2, 32 }
  0x2b   :  { %374 = vmatprep.subr.bf16.mxu0 %v538_v2  ;;  %408 = vmatprep.mubr.msk.bf16.mxu1 %vm541_vm0, %v538_v2  ;;  %v440_v17 = vld [vmem:[#allocation5 + $0x60] sm:$0xff]   ;;  %v442_v19 = vld [vmem:[#allocation5 + $0x50] sm:$0xff]   ;;  %v443_v46 = vld [vmem:[#allocation5 + $0x48] sm:$0xff]   ;;  %p506_p1 = scmp.ne.s32.totalorder %s329_s2, %s505_s29  ;;  %p510_p2 = scmp.lt.s32.totalorder %s329_s2, %s329_s2 }
  0x2c   :  { %393 = vmatpush3.bf16.msra.mxu1 %v437_v11  ;;  %v86_v26 = vld [vmem:[#allocation7] sm:$0xf]  ;;  %v87_v33 = vld [vmem:[#allocation7 + $0x4] sm:$0x1]  ;;  %v88_v48 = vld [vmem:[#allocation7 + $0x5] sm:$0x1]  ;;  %p511_p3 = scmp.lt.s32.totalorder %s509_s30, %s505_s29 }
  0x2d   :  { %425 = vset.pattern.permute.xlu0 %v539_v6  ;;  %427 = vset.pattern.permute.xlu1 %v540_v7  ;;  %v444_v47 = vld [vmem:[#allocation5 + $0x40] sm:$0xff]  }
  0x2e   :  { %102 = vperm.xlu0 %425, %v53_v3   ;;  %128 = vperm.xlu1 %427, %v53_v3   ;;  %v89_v56 = vld [vmem:[#allocation7 + $0x6] sm:$0x1]  ;;  %p512_p4 = por %p511_p3, %p510_p2 }
  0x2f   :  { %375 = vmatpush3.bf16.msra.mxu0 %v430_v5  ;;  %394 = vmatprep.subr.bf16.mxu1 %v538_v2 }
  0x30   :  { %376 = vmatprep.subr.bf16.mxu0 %v538_v2  ;;  %395 = vmatpush3.bf16.msra.mxu1 %v438_v13  ;;  %p513_p5 = pnand %p512_p4, %p506_p1 }
  0x31   :  { %396 = vmatprep.subr.bf16.mxu1 %v538_v2 }
  0x32   :  { %428 = vset.pattern.permute.xlu0 %v540_v7 }
  0x33   :  { %377 = vmatpush3.bf16.msra.mxu0 %v431_v8 }
  0x34   :  { %378 = vmatprep.subr.bf16.mxu0 %v538_v2  ;;  %397 = vmatpush3.bf16.msra.mxu1 %v439_v15 }
  0x35   :  { %398 = vmatprep.subr.bf16.mxu1 %v538_v2 }
  0x37   :  { %379 = vmatpush3.bf16.msra.mxu0 %v432_v9 }
  0x38   :  { %380 = vmatprep.subr.bf16.mxu0 %v538_v2  ;;  %399 = vmatpush3.bf16.msra.mxu1 %v440_v17 }
  0x39   :  { %400 = vmatprep.subr.bf16.mxu1 %v538_v2 }
  0x3b   :  { %381 = vmatpush3.bf16.msra.mxu0 %v433_v10 }
  0x3c   :  { %382 = vmatprep.subr.bf16.mxu0 %v538_v2  ;;  %401 = vmatpush3.bf16.msra.mxu1 %v441_v18 }
  0x3d   :  { %402 = vmatprep.subr.bf16.mxu1 %v538_v2 }
  0x3f   :  { %383 = vmatpush3.bf16.msra.mxu0 %v434_v12 }
  0x40   :  { %384 = vmatprep.subr.bf16.mxu0 %v538_v2  ;;  %403 = vmatpush3.bf16.msra.mxu1 %v442_v19 }
  0x41   :  { %404 = vmatprep.subr.bf16.mxu1 %v538_v2 }
  0x43   :  { %385 = vmatpush3.bf16.msra.mxu0 %v435_v14 }
  0x44   :  { %386 = vmatprep.subr.bf16.mxu0 %v538_v2  ;;  %405 = vmatpush3.bf16.msra.mxu1 %v443_v46 }
  0x45   :  { %406 = vmatprep.subr.bf16.mxu1 %v538_v2 }
  0x47   :  { %387 = vmatpush3.bf16.msra.mxu0 %v436_v16 }
  0x48   :  { %407 = vmatpush3.bf16.msra.mxu1 %v444_v47 }
  0xa4   :  { %v93_v23 = vpop.permute.xlu0 %92  ;;  %v116_v24 = vpop.permute.xlu1 %115 }
  0xa5   :  { %v98_v25 = vrot.slane %v93_v23, %v97_v22  ;;  %v121_v27 = vrot.slane %v116_v24, %v97_v22 }
  0xa7   :  { %v99_v30 = vmul.f32 %v98_v25, %v86_v26  ;;  %v122_v34 = vmul.f32 %v121_v27, %v86_v26 }
  0xa9   :  { %v103_v28 = vpop.permute.xlu0 %102  ;;  %v129_v29 = vpop.permute.xlu1 %128  ;;  %v100_v37 = vadd.f32 %v99_v30, %v87_v33  ;;  %v124_v39 = vrot.slane %v122_v34, 2 }
  0xaa   :  { %v108_v31 = vrot.slane %v103_v28, %v97_v22  ;;  %v134_v32 = vrot.slane %v129_v29, %v97_v22 }
  0xac   :  { %v109_v35 = vmul.f32 %v108_v31, %v86_v26  ;;  %v135_v36 = vmul.f32 %v134_v32, %v86_v26 }
  0xae   :  { %v111_v38 = vrot.slane %v109_v35, 1  ;;  %v137_v41 = vrot.slane %v135_v36, 3 }
  0xb0   :  { %v113_v40 = vadd.f32 %v111_v38, %v100_v37 }
  0xb2   :  { %v126_v42 = vadd.f32 %v124_v39, %v113_v40 }
  0xb4   :  { %v139_v43 = vadd.f32 %v137_v41, %v126_v42 }
  0xb6   :  { %v140_v44 = vmax.f32 %v139_v43, 0.0 }
  0xb8   :  { %v141_v45 = vpack.c.bf16 %v140_v44, %v140_v44 }
  0xba   :  { %389 = vmatmul.mubr.bf16.vlgmr.msra.gmra.mxu0 %v141_v45 }
 0x17a   :  { %v224_v49 = vpop.f32.mrf.mxu0 }
 0x17b   :  { %v225_v50 = vadd.f32 %v224_v49, %v88_v48 }
 0x17c   :  { %v390_v51 = vpop.f32.mrf.mxu0 }
 0x17d   :  { %v230_v52 = vmax.f32 %v225_v50, 0.0 }
 0x17e   :  { %v227_v53 = vpop.f32.mrf.mxu0 }
 0x17f   :  { %v231_v54 = vpack.c.bf16 %v230_v52, %v230_v52 }
 0x180   :  { %v391_v55 = vpop.f32.mrf.mxu0 }
 0x181   :  { %409 = vmatmul.mubr.bf16.vlgmr.msra.gmra.mxu1 %v231_v54 }
 0x241   :  { %v314_v57 = vpop.f32.mrf.mxu1 }
 0x242   :  { %v315_v58 = vadd.f32 %v314_v57, %v89_v56 }
 0x243   :  { %v410_v59 = vpop.f32.mrf.mxu1 }
 0x244   :  { %321 = vst.msk [vmem:[#allocation8] sm:$0x1] %vm320_vm1, %v315_v58 }
 0x245   :  { %v317_v60 = vpop.f32.mrf.mxu1 }
 0x246   :  { %516 = shalt.err (!%p513_p5)
}
 0x247   :  { %331 = dma.vmem_to_hbm [thread:$0]  %s329_s2, 16, %s596_s3, [#allocation4]   ;;  %v411_v61 = vpop.f32.mrf.mxu1 }
 0x248   :  { %529 = dma.done.wait [#allocation4], 16  }
 0x249   :  { %530 = vsyncadd [#allocation4], 4294967280 }
 0x24a   :  { %335 = vsyncpa [#allocation3], 1 }
 0x24b   :  { %336 = vsyncpa [#allocation6], 1 }
 0x24c   :  { %337 = vsyncpa [#allocation4], 1 }

</bundles_post_ra>
